<compile_context>
chip_gen: v6e
topology: v6e:2x2x1
jax: 0.10.0
libtpu: 0.0.40
codegen_flags: <defaults>
</compile_context>

<pallas_src>
import numpy as np
import jax
import jax.numpy as jnp
from jax.experimental import pallas as pl
from jax.experimental.pallas import tpu as pltpu


def _round_up(x, m):
    return ((x + m - 1) // m) * m


def _vmem_budget_limits():
    """Generation-aware VMEM budget (tile sizing) and scoped limit (compiler param)."""
    cap = 64 * 1024 * 1024                       # safe fallback (v7x per-TC capacity)
    try:
        cap = int(pltpu.get_tpu_info().vmem_capacity_bytes)
    except Exception:
        pass
    budget = int(cap * 0.45)                     # tiles + in-kernel temporaries target
    limit = int(cap * 0.70)                      # scoped VMEM limit handed to Mosaic
    return budget, limit


# ----------------------------------------------------------------------------------
# Fused linear kernel:  (optional LN) -> bf16 MXU matmul + bias -> (GELU) -> (+res)
# ----------------------------------------------------------------------------------
def _make_fused_linear_kernel(act, has_ln, has_res):
    def kern(*refs):
        it = iter(refs)
        x_ref = next(it)
        if has_ln:
            g_ref = next(it)
            bt_ref = next(it)
        w_ref = next(it)
        b_ref = next(it)
        if has_res:
            r_ref = next(it)
        o_ref = next(it)

        x = x_ref[...].astype(jnp.float32)                       # (tm, Cin)
        if has_ln:
            mu = jnp.mean(x, axis=-1, keepdims=True)
            var = jnp.mean(jnp.square(x - mu), axis=-1, keepdims=True)
            x = (x - mu) * jax.lax.rsqrt(var + 1e-5) * g_ref[...] + bt_ref[...]
        y = jnp.dot(x.astype(jnp.bfloat16), w_ref[...],
                    preferred_element_type=jnp.float32)          # MXU, f32 accumulation
        y = y + b_ref[...]
        if act == "gelu":
            # exact GELU (erf formulation) to match nn.GELU's default
            y = 0.5 * y * (1.0 + jax.lax.erf(y * 0.7071067811865475))
        if has_res:
            y = y + r_ref[...].astype(jnp.float32)
        o_ref[...] = y.astype(o_ref.dtype)
    return kern


def _linear_tile_rows(N, Cin, Cout, has_res, budget_bytes):
    Ci, Co = _round_up(Cin, 128), _round_up(Cout, 128)
    fixed = 2 * Ci * Co * 2 + 4 * (Ci + Co) * 4          # dbl-buffered bf16 weight + vectors
    per_row = 2 * (Ci * 4 + Co * 4) + (2 * Co * 4 if has_res else 0) + 4 * (Ci + Co) * 4
    tm = max(8, (budget_bytes - fixed) // per_row)
    tm = min(tm, 2048)
    if N > 16:                                           # keep >= 2 grid steps (v7x megacore)
        tm = min(tm, _round_up((N + 1) // 2, 8))
    tm = min(tm, _round_up(N, 8))
    return int(max(8, (tm // 8) * 8))


def fused_linear(x, w, b, *, gamma=None, beta=None, act=None, residual=None,
                 out_dtype=jnp.float32):
    """y = [LN(x)] @ w + b  [GELU]  [+ residual].   x:(N,Cin)  w:(Cin,Cout)  b:(Cout,)."""
    N, Cin = x.shape
    Cout = w.shape[1]
    has_ln = gamma is not None
    has_res = residual is not None

    budget, limit = _vmem_budget_limits()
    tm = _linear_tile_rows(N, Cin, Cout, has_res, budget)

    inputs = [x]
    in_specs = [pl.BlockSpec((tm, Cin), lambda i: (i, 0))]
    if has_ln:
        inputs += [gamma.reshape(1, Cin).astype(jnp.float32),
                   beta.reshape(1, Cin).astype(jnp.float32)]
        in_specs += [pl.BlockSpec((1, Cin), lambda i: (0, 0)),
                     pl.BlockSpec((1, Cin), lambda i: (0, 0))]
    inputs += [w.astype(jnp.bfloat16), b.reshape(1, Cout).astype(jnp.float32)]
    in_specs += [pl.BlockSpec((Cin, Cout), lambda i: (0, 0)),
                 pl.BlockSpec((1, Cout), lambda i: (0, 0))]
    if has_res:
        inputs.append(residual)
        in_specs.append(pl.BlockSpec((tm, Cout), lambda i: (i, 0)))

    return pl.pallas_call(
        _make_fused_linear_kernel(act, has_ln, has_res),
        out_shape=jax.ShapeDtypeStruct((N, Cout), out_dtype),
        grid=(pl.cdiv(N, tm),),                   # ragged tail handled by Pallas; no pad copies
        in_specs=in_specs,
        out_specs=pl.BlockSpec((tm, Cout), lambda i: (i, 0)),
        compiler_params=pltpu.CompilerParams(
            dimension_semantics=("parallel",),
            vmem_limit_bytes=limit),
    )(*inputs)


# ----------------------------------------------------------------------------------
# Window attention kernel (neighbor-list formulation of the index-pair attention)
# ----------------------------------------------------------------------------------
def _make_attn_kernel(H, D):
    def kern(q_ref, kg_ref, vg_ref, b_ref, o_ref):
        # q (tn, C) bf16 | kg/vg (tn, K, C) bf16 | b (tn, H, K) bf16 (mask folded as -1e30)
        q = q_ref[...]                                           # small, keep resident
        b = b_ref[...]
        heads = []
        for h in range(H):
            sl = slice(h * D, (h + 1) * D)
            kh = kg_ref[:, :, sl]                                # (tn, K, D) bf16, lazy slice
            vh = vg_ref[:, :, sl]                                # (tn, K, D) bf16
            qh = q[:, None, sl]                                  # (tn, 1, D) bf16
            # batched MXU contraction over D (row batch), f32 accumulation
            s = jnp.einsum("nqd,nkd->nqk", qh, kh,
                           preferred_element_type=jnp.float32)[:, 0, :]        # (tn, K)
            logits = s + b[:, h, :].astype(jnp.float32)
            # single masking path: bias already holds -1e30 on invalid slots.  Fully-masked
            # rows (only zero-count / ragged-tail rows; every real point has a self pair)
            # softmax to a uniform 1/K and are never consumed downstream.
            mx = jnp.max(logits, axis=-1, keepdims=True)
            e = jnp.exp(logits - mx)
            p = e * pl.reciprocal(jnp.sum(e, axis=-1, keepdims=True), approx=True)
            # batched MXU contraction over K
            oh = jnp.einsum("nqk,nkd->nqd", p[:, None, :].astype(jnp.bfloat16), vh,
                            preferred_element_type=jnp.float32)[:, 0, :]       # (tn, D)
            heads.append(oh)
        # one lane-dense (tn, C) store instead of H masked D-wide partial stores
        o_ref[...] = jnp.concatenate(heads, axis=-1).astype(o_ref.dtype)
    return kern


def _attn_tile_rows(N, K, C, H, budget_bytes):
    D = C // H
    Cl, Kl = _round_up(C, 128), _round_up(K, 128)
    Kp, Dl = _round_up(K, 8), _round_up(D, 128)
    # double-buffered bf16 input/output blocks, bytes per tile-row
    io = 2 * (Cl * 2 + 2 * Kp * Cl * 2 + H * Kl * 2 + Cl * 2)
    # live per-head temporaries (bf16 K/V slices, f32 softmax rows, f32 head accumulators)
    tmp = 2 * Kp * Dl * 2 + 3 * Kl * 4 + 2 * Cl * 4
    tn = max(8, budget_bytes // max(io + tmp, 1))
    tn = min(tn, 2048)
    if N > 16:                                           # keep >= 2 grid steps (v7x megacore)
        tn = min(tn, _round_up((N + 1) // 2, 8))
    tn = min(tn, _round_up(N, 8))
    return int(max(8, (tn // 8) * 8))


def pallas_window_attention(q, kg, vg, bias, num_heads, out_dtype=jnp.bfloat16):
    """q:(N,C) bf16 | kg/vg:(N,K,C) bf16 | bias:(N,H,K) bf16 (mask folded) -> (N,C)."""
    N, C = q.shape
    K = kg.shape[1]
    H = num_heads
    D = C // H
    budget, limit = _vmem_budget_limits()
    tn = _attn_tile_rows(N, K, C, H, budget)
    return pl.pallas_call(
        _make_attn_kernel(H, D),
        out_shape=jax.ShapeDtypeStruct((N, C), out_dtype),
        grid=(pl.cdiv(N, tn),),                   # ragged tail handled by Pallas; no pad copies
        in_specs=[
            pl.BlockSpec((tn, C), lambda i: (i, 0)),
            pl.BlockSpec((tn, K, C), lambda i: (i, 0, 0)),
            pl.BlockSpec((tn, K, C), lambda i: (i, 0, 0)),
            pl.BlockSpec((tn, H, K), lambda i: (i, 0, 0)),
        ],
        out_specs=pl.BlockSpec((tn, C), lambda i: (i, 0)),
        compiler_params=pltpu.CompilerParams(
            dimension_semantics=("parallel",),    # row tiles shard across TensorCores
            vmem_limit_bytes=limit),
    )(q, kg, vg, bias)


# ----------------------------------------------------------------------------------
# Host-side (numpy) preprocessing glue — data-dependent index construction
# ----------------------------------------------------------------------------------
def grid_sample_np(pos, batch, size, start):
    # TODO(synk): torch_cluster.voxel_grid exact cluster ids not reproduced; grouping semantics equivalent.
    if start is None:
        start = pos.min(0)
    coord = np.floor((pos - start) / size).astype(np.int64)
    key = np.concatenate([batch[:, None], coord], axis=1)
    _, inv, counts = np.unique(key, axis=0, return_inverse=True, return_counts=True)
    inv = np.asarray(inv).reshape(-1)
    n = counts.shape[0]
    k = int(counts.max())
    p2v = np.zeros((n, k), dtype=np.int64)
    mask = np.arange(k)[None, :] < counts[:, None]
    p2v[mask] = np.argsort(inv, kind="stable")
    return inv, p2v, counts


def fps_np(xyz, offset, new_offset):
    # TODO(synk): pointops.furthestsampling tie-breaking not bit-exact; algorithm identical (FPS from first point).
    out = []
    start, nstart = 0, 0
    for b in range(len(offset)):
        end, nend = int(offset[b]), int(new_offset[b])
        pts = xyz[start:end]
        m = nend - nstart
        dist = np.full(pts.shape[0], 1e10, dtype=np.float64)
        cur = 0
        sel = np.zeros(m, dtype=np.int64)
        for j in range(m):
            sel[j] = cur
            d = np.sum((pts - pts[cur]) ** 2, axis=1)
            dist = np.minimum(dist, d)
            cur = int(np.argmax(dist))
        out.append(sel + start)
        start, nstart = end, nend
    return np.concatenate(out)


def get_indice_pairs_np(p2v_map, counts, new_p2v_map, new_counts,
                        downsample_idx, batch, xyz, window_size, i):
    n, k = p2v_map.shape
    mask = np.arange(k)[None, :] < counts[:, None]
    mask_mat = mask[:, :, None] & mask[:, None, :]
    index_0 = np.broadcast_to(p2v_map[:, :, None], (n, k, k))[mask_mat]
    index_1 = np.broadcast_to(p2v_map[:, None, :], (n, k, k))[mask_mat]

    downsample_mask = np.zeros(batch.shape[0], dtype=bool)
    downsample_mask[downsample_idx.astype(np.int64)] = True
    downsample_mask = downsample_mask[new_p2v_map]
    n2, k2 = new_p2v_map.shape
    mask2 = np.arange(k2)[None, :] < new_counts[:, None]
    downsample_mask = downsample_mask & mask2
    mask_mat2 = mask2[:, :, None] & downsample_mask[:, None, :]
    xyz_min = xyz.min(0)
    if i % 2 == 0:
        window_coord = np.floor_divide(xyz[new_p2v_map] - xyz_min, window_size)
    else:
        window_coord = np.floor_divide(xyz[new_p2v_map] + 0.5 * window_size - xyz_min, window_size)
    mask_mat_prev = (window_coord[:, :, None, :] != window_coord[:, None, :, :]).any(-1)
    mask_mat2 = mask_mat2 & mask_mat_prev
    new_index_0 = np.broadcast_to(new_p2v_map[:, :, None], (n2, k2, k2))[mask_mat2]
    new_index_1 = np.broadcast_to(new_p2v_map[:, None, :], (n2, k2, k2))[mask_mat2]
    index_0 = np.concatenate([index_0, new_index_0], 0)
    index_1 = np.concatenate([index_1, new_index_1], 0)
    return index_0, index_1


# ----------------------------------------------------------------------------------
# Model forward (plain-JAX glue calling the Pallas kernels)
# ----------------------------------------------------------------------------------
def swin_block_forward(p, feats, xyz, nbr_idx, nbr_mask, cfg):
    N, C = feats.shape
    H = cfg["num_heads"]
    D = C // H
    scale = D ** (-0.5)
    ws = cfg["window_size"]
    qs = cfg["quant_size"]
    L = cfg["quant_grid_length"]
    L2 = 2 * L
    K = nbr_idx.shape[1]

    shortcut = feats                                               # f32 residual stream

    # LayerNorm1 fused into the qkv projection (one Pallas kernel, bf16 MXU matmul)
    qkv = fused_linear(feats, p["qkv_w"], p["qkv_b"],
                       gamma=p["norm1_g"], beta=p["norm1_b"],
                       out_dtype=jnp.float32)                      # (N, 3C)
    q = qkv[:, :C] * jnp.float32(scale)      # heads live on contiguous lane slices of C
    k = qkv[:, C:2 * C]
    v = qkv[:, 2 * C:]

    # relative position quantization (glue)
    rel = xyz[:, None, :] - xyz[nbr_idx]                           # (N, K, 3)
    rel = jnp.round(rel * 100000.0) / 100000.0
    rel_idx = jnp.floor_divide(rel + 2.0 * ws - 0.0001, qs).astype(jnp.int32)
    rel_idx = jnp.clip(rel_idx, 0, L2 - 1)

    # fold the rel-pos tables algebraically: per-head (N, 2L) matmuls + scalar gathers
    # bias[i,k,h] = sum_c ( q[i,h,:]·T_q[l,h,:,c] + k[j,h,:]·T_k[l,h,:,c] ),
    #              l = rel_idx[i,k,c], j = nbr_idx[i,k]
    qh3 = q.reshape(N, H, D)
    kh3 = k.reshape(N, H, D)
    rows = jnp.arange(N, dtype=jnp.int32)[:, None]
    bias = jnp.zeros((N, K, H), jnp.float32)
    for c in range(3):
        bq_c = jnp.einsum("nhd,lhd->nlh", qh3, p["rel_q_table"][..., c]).reshape(N * L2, H)
        bk_c = jnp.einsum("nhd,lhd->nlh", kh3, p["rel_k_table"][..., c]).reshape(N * L2, H)
        li = rel_idx[:, :, c]
        bias = bias + bq_c[rows * L2 + li] + bk_c[nbr_idx * L2 + li]
    # fold the validity mask (single masking mechanism) and lay out lane-dense per row
    bias = jnp.where(nbr_mask[:, :, None] > 0.5, bias, jnp.float32(-1e30))
    bias = jnp.transpose(bias, (0, 2, 1)).astype(jnp.bfloat16)     # (N, H, K)

    # neighbor key/value gather in bf16 (cast BEFORE the gather -> half the gather traffic)
    # TODO(synk): in-kernel gather (scalar-prefetch nbr_idx + DMA row gather / window-centric
    #             tiling) would avoid materializing (N,K,C) in HBM entirely; left to XLA glue.
    kg = jnp.take(k.astype(jnp.bfloat16), nbr_idx, axis=0)         # (N, K, C) bf16
    vg = jnp.take(v.astype(jnp.bfloat16), nbr_idx, axis=0)

    attn = pallas_window_attention(q.astype(jnp.bfloat16), kg, vg, bias, H)   # (N, C) bf16

    # proj with fused residual add (drop_path = Identity)
    feats1 = fused_linear(attn, p["proj_w"], p["proj_b"], residual=shortcut,
                          out_dtype=jnp.float32)
    # MLP: LayerNorm2 fused into fc1 (+GELU, bf16 hidden), residual fused into fc2
    h2 = fused_linear(feats1, p["fc1_w"], p["fc1_b"],
                      gamma=p["norm2_g"], beta=p["norm2_b"], act="gelu",
                      out_dtype=jnp.bfloat16)
    out = fused_linear(h2, p["fc2_w"], p["fc2_b"], residual=feats1,
                       out_dtype=jnp.float32)
    return out


def basic_layer_forward(params, feats, xyz, offset, cfg):
    xyz_np = np.asarray(xyz, dtype=np.float32)
    offset_np = np.asarray(offset, dtype=np.int64)
    window_size = np.array([cfg["window_size"]] * 3, dtype=np.float32)

    offs_ = offset_np.copy()
    offs_[1:] = offs_[1:] - offs_[:-1]
    batch = np.concatenate([np.full(int(o), ii, dtype=np.int64) for ii, o in enumerate(offs_)])

    _, p2v_map, counts = grid_sample_np(xyz_np, batch, window_size, start=None)
    _, s_p2v_map, s_counts = grid_sample_np(xyz_np + 0.5 * window_size, batch, window_size,
                                            start=xyz_np.min(0))

    ds = cfg["downsample_scale"]
    new_offset = [int(offset_np[0]) // ds + 1]
    count = new_offset[0]
    for i in range(1, offset_np.shape[0]):
        count += (int(offset_np[i]) - int(offset_np[i - 1])) // ds + 1
        new_offset.append(count)
    downsample_idx = fps_np(xyz_np, offset_np, np.array(new_offset))

    new_ws = 2.0 * window_size
    _, n_p2v_map, n_counts = grid_sample_np(xyz_np, batch, new_ws, start=None)
    _, sn_p2v_map, sn_counts = grid_sample_np(xyz_np + 0.5 * new_ws, batch, new_ws,
                                              start=xyz_np.min(0))

    N = feats.shape[0]
    xyz_j = jnp.asarray(xyz_np)
    for i in range(cfg["depth"]):
        if i % 2 == 0:
            pm, cm, npm, ncm = p2v_map, counts, n_p2v_map, n_counts
        else:
            pm, cm, npm, ncm = s_p2v_map, s_counts, sn_p2v_map, sn_counts
        i0, i1 = get_indice_pairs_np(pm, cm, npm, ncm, downsample_idx, batch,
                                     xyz_np, window_size, i)
        order = np.argsort(i0, kind="stable")
        i0, i1 = i0[order], i1[order]
        cnt = np.bincount(i0, minlength=N)
        n_max = int(cnt.max()) if cnt.size else 0
        K = int(_round_up(max(n_max, 1), 8))            # pad K to a sublane multiple
        offs = np.concatenate([[0], np.cumsum(cnt)]).astype(np.int64)
        pos = np.arange(i0.shape[0]) - offs[i0]
        nbr_idx = np.zeros((N, K), dtype=np.int32)
        nbr_mask = np.zeros((N, K), dtype=np.float32)
        nbr_idx[i0, pos] = i1
        nbr_mask[i0, pos] = 1.0
        feats = swin_block_forward(params["blocks"][i], feats, xyz_j,
                                   jnp.asarray(nbr_idx), jnp.asarray(nbr_mask), cfg)
    # downsample=None in this configuration
    return feats, xyz, offset, None, None, None


# ----------------------------------------------------------------------------------
# Deterministic parameter init
# ----------------------------------------------------------------------------------
def init_params(key, cfg):
    C = cfg["channel"]
    H = cfg["num_heads"]
    D = C // H
    L = cfg["quant_grid_length"]
    hidden = int(C * cfg["mlp_ratio"])

    def tn(k, shape, std=0.02):
        return std * jax.random.truncated_normal(k, -2.0, 2.0, shape, jnp.float32)

    blocks = []
    for _ in range(cfg["depth"]):
        key, k0, k1, k2, k3, k4, k5 = jax.random.split(key, 7)
        blocks.append(dict(
            norm1_g=jnp.ones((C,), jnp.float32), norm1_b=jnp.zeros((C,), jnp.float32),
            qkv_w=tn(k0, (C, 3 * C)), qkv_b=jnp.zeros((3 * C,), jnp.float32),
            proj_w=tn(k1, (C, C)), proj_b=jnp.zeros((C,), jnp.float32),
            norm2_g=jnp.ones((C,), jnp.float32), norm2_b=jnp.zeros((C,), jnp.float32),
            fc1_w=tn(k2, (C, hidden)), fc1_b=jnp.zeros((hidden,), jnp.float32),
            fc2_w=tn(k3, (hidden, C)), fc2_b=jnp.zeros((C,), jnp.float32),
            rel_q_table=tn(k4, (2 * L, H, D, 3)),
            rel_k_table=tn(k5, (2 * L, H, D, 3)),
        ))
    return {"blocks": blocks}


# ----------------------------------------------------------------------------------
if __name__ == "__main__":
    cfg = dict(depth=2, channel=32, num_heads=2, window_size=0.4, quant_size=0.04,
               downsample_scale=8, mlp_ratio=4.0)
    cfg["quant_grid_length"] = int((2 * cfg["window_size"] + 0.0001) // cfg["quant_size"])

    key = jax.random.PRNGKey(0)
    kf, kx, kp = jax.random.split(key, 3)
    N1, N2 = 24, 24
    N = N1 + N2
    C = cfg["channel"]

    feats = jax.random.normal(kf, (N, C), jnp.float32)
    xyz = jax.random.uniform(kx, (N, 3), jnp.float32, 0.0, 1.0)
    offset = np.array([N1, N], dtype=np.int32)

    params = init_params(kp, cfg)
    out_feats, out_xyz, out_offset, fd, xd, od = basic_layer_forward(params, feats, xyz, offset, cfg)
    out_feats = jax.block_until_ready(out_feats)

    assert out_feats.shape == (N, C)
    assert bool(jnp.all(jnp.isfinite(out_feats)))
    print("KERNEL_OK")
</pallas_src>

<mosaic_0001>
module attributes {stable_mosaic.version = 11 : i64} {
  func.func @kern(%arg0: i32, %arg1: memref<24x32xf32, #tpu.memory_space<vmem>>, %arg2: memref<1x32xf32, #tpu.memory_space<vmem>>, %arg3: memref<1x32xf32, #tpu.memory_space<vmem>>, %arg4: memref<32x96xbf16, #tpu.memory_space<vmem>>, %arg5: memref<1x96xf32, #tpu.memory_space<vmem>>, %arg6: memref<24x96xf32, #tpu.memory_space<vmem>>) attributes {dimension_semantics = [#tpu.dimension_semantics<parallel>], iteration_bounds = array<i64: 2>, scalar_prefetch = 0 : i64, scratch_operands = 0 : i64, tpu.core_type = #tpu.core_type<tc>, window_params = [{transform_indices = @transform_0, window_bounds = array<i64: 24, 32>}, {pipeline_mode = #tpu.pipeline_mode<synchronous>, transform_indices = @transform_1, window_bounds = array<i64: 1, 32>}, {pipeline_mode = #tpu.pipeline_mode<synchronous>, transform_indices = @transform_2, window_bounds = array<i64: 1, 32>}, {pipeline_mode = #tpu.pipeline_mode<synchronous>, transform_indices = @transform_3, window_bounds = array<i64: 32, 96>}, {pipeline_mode = #tpu.pipeline_mode<synchronous>, transform_indices = @transform_4, window_bounds = array<i64: 1, 96>}, {transform_indices = @transform_5, window_bounds = array<i64: 24, 96>}]} {
    %c0 = arith.constant 0 : index
    %c0_0 = arith.constant 0 : index
    %0 = vector.load %arg1[%c0, %c0_0] : memref<24x32xf32, #tpu.memory_space<vmem>>, vector<24x32xf32>
    %cst = arith.constant dense<0.000000e+00> : vector<24xf32>
    %1 = vector.multi_reduction <add>, %0, %cst [1] : vector<24x32xf32> to vector<24xf32>
    %2 = vector.shape_cast %1 : vector<24xf32> to vector<24x1xf32>
    %cst_1 = arith.constant 3.200000e+01 : f32
    %3 = vector.broadcast %cst_1 : f32 to vector<24x1xf32>
    %4 = arith.divf %2, %3 : vector<24x1xf32>
    %5 = vector.broadcast %4 : vector<24x1xf32> to vector<24x32xf32>
    %6 = arith.subf %0, %5 : vector<24x32xf32>
    %7 = arith.mulf %6, %6 : vector<24x32xf32>
    %cst_2 = arith.constant dense<0.000000e+00> : vector<24xf32>
    %8 = vector.multi_reduction <add>, %7, %cst_2 [1] : vector<24x32xf32> to vector<24xf32>
    %9 = vector.shape_cast %8 : vector<24xf32> to vector<24x1xf32>
    %cst_3 = arith.constant 3.200000e+01 : f32
    %10 = vector.broadcast %cst_3 : f32 to vector<24x1xf32>
    %11 = arith.divf %9, %10 : vector<24x1xf32>
    %12 = vector.broadcast %4 : vector<24x1xf32> to vector<24x32xf32>
    %13 = arith.subf %0, %12 : vector<24x32xf32>
    %cst_4 = arith.constant 9.99999974E-6 : f32
    %14 = vector.broadcast %cst_4 : f32 to vector<24x1xf32>
    %15 = arith.addf %11, %14 : vector<24x1xf32>
    %16 = math.rsqrt %15 : vector<24x1xf32>
    %17 = vector.broadcast %16 : vector<24x1xf32> to vector<24x32xf32>
    %18 = arith.mulf %13, %17 : vector<24x32xf32>
    %c0_5 = arith.constant 0 : index
    %c0_6 = arith.constant 0 : index
    %19 = vector.load %arg2[%c0_5, %c0_6] : memref<1x32xf32, #tpu.memory_space<vmem>>, vector<1x32xf32>
    %20 = vector.broadcast %19 : vector<1x32xf32> to vector<24x32xf32>
    %21 = arith.mulf %18, %20 : vector<24x32xf32>
    %c0_7 = arith.constant 0 : index
    %c0_8 = arith.constant 0 : index
    %22 = vector.load %arg3[%c0_7, %c0_8] : memref<1x32xf32, #tpu.memory_space<vmem>>, vector<1x32xf32>
    %23 = vector.broadcast %22 : vector<1x32xf32> to vector<24x32xf32>
    %24 = arith.addf %21, %23 : vector<24x32xf32>
    %25 = arith.truncf %24 : vector<24x32xf32> to vector<24x32xbf16>
    %c0_9 = arith.constant 0 : index
    %c0_10 = arith.constant 0 : index
    %26 = vector.load %arg4[%c0_9, %c0_10] : memref<32x96xbf16, #tpu.memory_space<vmem>>, vector<32x96xbf16>
    %cst_11 = arith.constant dense<0.000000e+00> : vector<24x96xf32>
    %27 = tpu.matmul %25, %26, %cst_11 {dimension_numbers = #tpu.dot_dimension_numbers<[1], [0], [0], [1], [0, 0, 1, 1], [], []>} : vector<24x32xbf16>, vector<32x96xbf16>, vector<24x96xf32> -> vector<24x96xf32>
    %c0_12 = arith.constant 0 : index
    %c0_13 = arith.constant 0 : index
    %28 = vector.load %arg5[%c0_12, %c0_13] : memref<1x96xf32, #tpu.memory_space<vmem>>, vector<1x96xf32>
    %29 = vector.broadcast %28 : vector<1x96xf32> to vector<24x96xf32>
    %30 = arith.addf %27, %29 : vector<24x96xf32>
    %c0_14 = arith.constant 0 : index
    %c0_15 = arith.constant 0 : index
    %31 = vector.load %arg6[%c0_14, %c0_15] : memref<24x96xf32, #tpu.memory_space<vmem>>, vector<24x96xf32>
    tpu.vector_store %arg6[%c0_14, %c0_15], %30 {strides = array<i32>} : memref<24x96xf32, #tpu.memory_space<vmem>>, vector<24x96xf32>,
    return
  }
  func.func @transform_0(%arg0: i32) -> (i32, i32) {
    %c0_i32 = arith.constant 0 : i32
    %c0_i32_0 = arith.constant 0 : i32
    return %arg0, %c0_i32 : i32, i32
  }
  func.func @transform_1(%arg0: i32) -> (i32, i32) {
    %c0_i32 = arith.constant 0 : i32
    %c0_i32_0 = arith.constant 0 : i32
    %c0_i32_1 = arith.constant 0 : i32
    return %c0_i32, %c0_i32_0 : i32, i32
  }
  func.func @transform_2(%arg0: i32) -> (i32, i32) {
    %c0_i32 = arith.constant 0 : i32
    %c0_i32_0 = arith.constant 0 : i32
    %c0_i32_1 = arith.constant 0 : i32
    return %c0_i32, %c0_i32_0 : i32, i32
  }
  func.func @transform_3(%arg0: i32) -> (i32, i32) {
    %c0_i32 = arith.constant 0 : i32
    %c0_i32_0 = arith.constant 0 : i32
    %c0_i32_1 = arith.constant 0 : i32
    return %c0_i32, %c0_i32_0 : i32, i32
  }
  func.func @transform_4(%arg0: i32) -> (i32, i32) {
    %c0_i32 = arith.constant 0 : i32
    %c0_i32_0 = arith.constant 0 : i32
    %c0_i32_1 = arith.constant 0 : i32
    return %c0_i32, %c0_i32_0 : i32, i32
  }
  func.func @transform_5(%arg0: i32) -> (i32, i32) {
    %c0_i32 = arith.constant 0 : i32
    %c0_i32_0 = arith.constant 0 : i32
    return %arg0, %c0_i32 : i32, i32
  }
}

</mosaic_0001>

<bundles_post_ra>
// kernel: tpu_custom_call.1
= control target key start
LH: loop header
LB: loop body
LE: loop exit
PB: predicated region body
PF: predicated region fallthrough
CT: control target
= control target key end

     0   :  { %10 = vsyncpa [#allocation3], 0  ;;  %s747_s0 = inlined_call_operand.vmem [shape: f32[48,32], index: 0, kind: input, shape index: {}]   ;;  %s748_s1 = inlined_call_operand.vmem [shape: f32[1,32], index: 1, kind: input, shape index: {}]   ;;  %s749_s2 = inlined_call_operand.vmem [shape: f32[1,32], index: 2, kind: input, shape index: {}]   ;;  %s750_s3 = inlined_call_operand.vmem [shape: bf16[32,96], index: 3, kind: input, shape index: {}]   ;;  %s751_s4 = inlined_call_operand.vmem [shape: f32[1,96], index: 4, kind: input, shape index: {}]   ;;  %s752_s5 = inlined_call_operand.hbm [shape: f32[48,96], index: 5, kind: output, shape index: {}]  }
   0x1   :  { %12 = vsyncpa [#allocation3 + $0x1], 0  ;;  %s623_s18 = smov 0   ;;  %s625_s19 = smov 0  }
   0x2   :  { %s627_s20 = smov 0   ;;  %s629_s21 = smov 0  }
   0x3 LB: > { %s644_s22 = sadd.s32 4294967295, %s588_s21   ;;  %s450_s23 = sadd.s32 4294967294, %s588_s21   ;;  %s588_s21 = sphi %s629_s21, %s758_s21   ;;  %s584_s20 = sphi %s627_s20, %s757_s20   ;;  %s580_s19 = sphi %s625_s19, %s756_s19   ;;  %s576_s18 = sphi %s623_s18, %s755_s18  }
   0x4   : > { %s648_s24 = sadd.s32 1, %s588_s21   ;;  %s135_s25 = sadd.s32 1, %s584_s20 }
   0x5   : > { %s132_s26 = ssub.s32 %s588_s21, %s648_s24  ;;  %p145_p0 = scmp.ne.s32.totalorder %s584_s20, %s580_s19 }
   0x6   : > { %p133_p1 = scmp.eq.s32.totalorder %s132_s26, 0  ;;  %p146_p2 = scmp.eq.s32.totalorder %s644_s22, 1 }
   0x7   : > { %p151_p3 = scmp.ne.s32.totalorder %s580_s19, %s576_s18  ;;  %p152_p4 = scmp.eq.s32.totalorder %s450_s23, 1 }
   0x8   : > { %s659_s27 = scalar_select %p133_p1, %s584_s20, %s135_s25  }
   0x9   : > { %p661_p5 = por %p146_p2, %p145_p0  ;;  %p665_p6 = por %p152_p4, %p151_p3 }
   0xa   : > { %p453_p7 = scmp.ge.s32.totalorder %s588_s21, 1  ;;  %p191_p8 = scmp.lt.s32.totalorder %s588_s21, 3 }
   0xc   : > { %p192_p9 = pnand %p453_p7, %p191_p8 }
   0xd   : > { %s219_s30 = smul.u32 (!%p192_p9), 3, %s644_s22  ;;  %s216_s23 = sand.u32 (!%p192_p9), 1, %s580_s19  }
   0xe   : > { %195 = sbr.rel (%p192_p9) target bundleno = 554 (0x22a), region = 40  ;;  %s590_s13 = smov (!%p192_p9), [#allocation2]  }
   0xf   : > { %p220_p10 = scmp.lt.s32.totalorder (!%p192_p9), %s219_s30, 5  ;;  %s478_s25 = smul.u32 (!%p192_p9), 24, %s216_s23 }
  0x10   : > { %s532_s14 = sshll.u32 (!%p192_p9), %s590_s13, 4  ;;  %s533_s14 = int_to_ptr.vmem [resolvable:$false] %s532_s14 }
  0x11   : > { %s218_s7 = scalar_lea.vmem (!%p192_p9), [#allocation2], %s478_s25  ;;  %s534_s15 = scalar_lea.vmem (!%p192_p9), %s533_s14, 768 }
  0x12   : > { %s388_s8 = sshll.u32 (!%p192_p9), %s218_s7, 4  ;;  %s700_s8 = int_to_ptr.vmem [resolvable:$true] %s388_s8 }
  0x13   : > { %s760_s30 = smov (!%p220_p10, %s219_s30), 5  ;;  %vm230_vm0 = vcmask 261120   ;;  %v520_v21 = vld [vmem:[%s750_s3 + $0x8] sm:$0xff]   ;;  %v521_v22 = vld [vmem:[%s750_s3] sm:$0xff]   ;;  %vm370_vm1 = vcmask 785408   ;;  %s528_s12 = scalar_lea.vmem %s700_s8, 384 }
  0x14   : > { %s454_s6 = sshll.u32 %s760_s30, 3  ;;  %470 = vmatprep.subr.bf16.mxu0 %v520_v21  ;;  %v455_v34 = vld [vmem:[%s748_s1] ss:$0 sm:$0xff]  ;;  %p529_p11 = scmp.ne.s32.totalorder %s700_s8, %s528_s12 }
  0x15   : > { %s223_s9 = scalar_lea.vmem %s747_s0, %s454_s6  ;;  %471 = vmatpush3.bf16.msra.mxu0 %v520_v21  ;;  %v456_v40 = vld [vmem:[%s749_s2] ss:$0 sm:$0xff]  ;;  %s465_s6 = smul.u32 384, %s644_s22 }
  0x16   : > { %v227_v0 = vld [vmem:[%s223_s9] sm:$0xff]  ;;  %v229_v1 = vld [vmem:[%s223_s9 + $0x10] sm:$0xff]  ;;  %v228_v2 = vld [vmem:[%s223_s9 + $0x8] sm:$0xff]  ;;  %472 = vmatprep.subr.bf16.mxu0 %v521_v22  ;;  %s707_s22 = scalar_lea.sflag [#allocation3], %s216_s23  ;;  %p530_p12 = pnand %p529_p11, %p661_p5 }
  0x17   : > { %v231_v3 = vsel %vm230_vm0, %v227_v0, 0.0  ;;  %v237_v4 = vsel %vm230_vm0, %v229_v1, 0.0  ;;  %v234_v5 = vsel %vm230_vm0, %v228_v2, 0.0  ;;  %v457_v48 = vld [vmem:[%s751_s4] ss:$0 sm:$0xff]  ;;  %s705_s11 = scalar_lea.hbm %s752_s5, %s465_s6  ;;  %p535_p0 = scmp.lt.s32.totalorder %s700_s8, %s533_s14 }
  0x18   : > { %232 = vadd.xlane.f32.xlu0 %v231_v3  ;;  %238 = vadd.xlane.f32.xlu1 %v237_v4  ;;  %p531_p13 = pneg %p530_p12  ;;  %p536_p1 = scmp.lt.s32.totalorder %s534_s15, %s528_s12 }
  0x19   : > { %473 = vmatpush3.bf16.msra.mxu0 %v521_v22 }
  0x1a   : > { %p537_p2 = por %p536_p1, %p535_p0 }
  0x1c   : > { %235 = vadd.xlane.f32.xlu0 %v234_v5  ;;  %p538_p3 = pnand %p537_p2, %p531_p13 }
  0xa1   : > { %v233_v6 = vpop.xlane.xlu0 %232  ;;  %v239_v7 = vpop.xlane.xlu1 %238 }
  0xa2   : > { %v241_v8 = vmul.f32 0.03125, %v233_v6  ;;  %v243_v9 = vmul.f32 0.03125, %v239_v7 }
  0xa4   : > { %v244_v10 = vsub.f32 %v227_v0, %v241_v8  ;;  %v246_v11 = vsub.f32 %v229_v1, %v243_v9 }
  0xa5   : > { %v236_v12 = vpop.xlane.xlu0 %235 }
  0xa6   : > { %v242_v13 = vmul.f32 0.03125, %v236_v12  ;;  %v247_v14 = vmul.f32 %v244_v10, %v244_v10  ;;  %v249_v15 = vmul.f32 %v246_v11, %v246_v11 }
  0xa8   : > { %v245_v16 = vsub.f32 %v228_v2, %v242_v13  ;;  %v250_v17 = vsel %vm230_vm0, %v247_v14, 0.0  ;;  %v256_v18 = vsel %vm230_vm0, %v249_v15, 0.0 }
  0xa9   : > { %251 = vadd.xlane.f32.xlu1 %v250_v17 }
  0xaa   : > { %v248_v19 = vmul.f32 %v245_v16, %v245_v16 }
  0xac   : > { %v253_v20 = vsel %vm230_vm0, %v248_v19, 0.0 }
  0xad   : > { %257 = vadd.xlane.f32.xlu1 %v256_v18  ;;  %254 = vadd.xlane.f32.xlu0 %v253_v20 }
 0x132   : > { %v252_v23 = vpop.xlane.xlu1 %251 }
 0x133   : > { %v259_v24 = vmul.f32 0.03125, %v252_v23 }
 0x135   : > { %v262_v25 = vadd.f32 1e-05, %v259_v24 }
 0x136   : > { %v258_v26 = vpop.xlane.xlu1 %257  ;;  %v255_v27 = vpop.xlane.xlu0 %254 }
 0x137   : > { %522 = vrsqrt.f32 %v262_v25  ;;  %v261_v28 = vmul.f32 0.03125, %v258_v26  ;;  %v260_v29 = vmul.f32 0.03125, %v255_v27 }
 0x139   : > { %v264_v30 = vadd.f32 1e-05, %v261_v28  ;;  %v263_v31 = vadd.f32 1e-05, %v260_v29 }
 0x13b   : > { %524 = vrsqrt.f32 %v264_v30 }
 0x13c   : > { %526 = vrsqrt.f32 %v263_v31 }
 0x144   : > { %v523_v32 = vpop.eup %522 }
 0x145   : > { %v268_v33 = vmul.f32 %v523_v32, %v244_v10 }
 0x147   : > { %v278_v39 = vmul.f32 %v455_v34, %v268_v33 }
 0x148   : > { %v525_v35 = vpop.eup %524 }
 0x149   : > { %v527_v36 = vpop.eup %526  ;;  %v270_v37 = vmul.f32 %v525_v35, %v246_v11  ;;  %v288_v44 = vadd.f32 %v456_v40, %v278_v39 }
 0x14a   : > { %v269_v38 = vmul.f32 %v527_v36, %v245_v16 }
 0x14b   : > { %v280_v41 = vmul.f32 %v455_v34, %v270_v37 }
 0x14c   : > { %v279_v42 = vmul.f32 %v455_v34, %v269_v38 }
 0x14d   : > { %v290_v43 = vadd.f32 %v456_v40, %v280_v41 }
 0x14e   : > { %v289_v45 = vadd.f32 %v456_v40, %v279_v42 }
 0x14f   : > { %v292_v46 = vpack.c.bf16 %v290_v43, %v290_v43 }
 0x150   : > { %v291_v47 = vpack.c.bf16 %v289_v45, %v288_v44 }
 0x152   : > { %474 = vmatprep.mubr.msk.bf16.mxu0 %vm230_vm0, %v291_v47 }
 0x153   : > { %475 = vmatmul.mubr.msk.bf16.vlgmr.msra.gmra.mxu0 %vm230_vm0, %v292_v46 }
 0x213   : > { %v476_v49 = vpop.f32.mrf.mxu0 }
 0x214   : > { %v365_v50 = vadd.f32 %v476_v49, %v457_v48 }
 0x215   : > { %v356_v51 = vpop.f32.mrf.mxu0 }
 0x216   : > { %373 = vst.msk [vmem:[%s218_s7 + $0x10] sm:$0xff] %vm370_vm1, %v365_v50  ;;  %v357_v52 = vadd.f32 %v457_v48, %v356_v51 }
 0x217   : > { %v477_v53 = vpop.f32.mrf.mxu0 }
 0x218   : > { %371 = vst.msk [vmem:[%s218_s7] sm:$0xff] %vm370_vm1, %v357_v52 }
 0x219   : > { %v359_v54 = vpop.f32.mrf.mxu0 }
 0x21a   : > { %v360_v55 = vadd.f32 %v457_v48, %v359_v54 }
 0x21c   : > { %372 = vst.msk [vmem:[%s218_s7 + $0x8] sm:$0xff] %vm370_vm1, %v360_v55 }
 0x21d   : > { %541 = shalt.err (!%p538_p3)
}
 0x21e   : > { %s542_s16 = scalar_lea.hbm %s705_s11, 384  ;;  %s546_s25 = scalar_lea.hbm %s752_s5, 768 }
 0x21f   : > { %p543_p4 = scmp.ne.s32.totalorder %s705_s11, %s542_s16  ;;  %p547_p9 = scmp.lt.s32.totalorder %s705_s11, %s752_s5 }
 0x220   : > { %p548_p10 = scmp.lt.s32.totalorder %s546_s25, %s542_s16 }
 0x221   : > { %p544_p7 = pnand %p543_p4, %p661_p5 }
 0x222   : > { %p549_p11 = por %p548_p10, %p547_p9 }
 0x223   : > { %p545_p8 = pneg %p544_p7 }
 0x225   : > { %p550_p12 = pnand %p549_p11, %p545_p8 }
 0x227   : > { %553 = shalt.err (!%p550_p12)
}
 0x228   : > { %s591_s6 = smov 128   ;;  %s592_s7 = smov 8  }
 0x229   : > { %479 = dma.vmem_to_hbm [thread:$0]  (%p661_p5), %s700_s8, 384, %s705_s11, %s707_s22, %s591_s6, %s591_s6, %s592_s7  }
 0x22a PF: > { %p485_p13 = scmp.ge.s32.totalorder %s588_s21, 2  ;;  %s403_s9 = sand.u32 1, %s576_s18  }
 0x22b   : > { %s404_s10 = scalar_lea.sflag [#allocation3], %s403_s9 }
 0x22c   : > { %p482_p0 = pnand %p485_p13, %p665_p6 }
 0x22e   : > { %p483_p1 = pneg %p482_p0 }
 0x230   : > { %571 = dma.done.wait (%p483_p1), %s404_s10, 384  }
 0x231   : > { %573 = vsyncadd (%p483_p1), %s404_s10, 4294966912  ;;  %p15_p2 = scmp.ge.s32.totalorder %s648_s24, 4   ;;  %s755_s18 = smov %s580_s19 }
 0x232   : > { %s756_s19 = smov %s584_s20  ;;  %s757_s20 = smov %s659_s27 }
 0x233   : > { %s758_s21 = smov %s648_s24  ;;  %17 = sbr.rel (!%p15_p2) target bundleno = 3 (0x3), region = 75 }
 0x238   :  { %409 = vsyncpa [#allocation3], 1 }
 0x239   :  { %411 = vsyncpa [#allocation3 + $0x1], 1 }

</bundles_post_ra>
